<compile_context>
chip_gen: v7x
topology: tpu7x:2x2x1
jax: 0.10.0
libtpu: 0.0.40
codegen_flags: <defaults>
</compile_context>

<pallas_src>
import jax
import jax.numpy as jnp
from jax import lax
from jax.experimental import pallas as pl
from jax.experimental.pallas import tpu as pltpu

_EPS = 1e-8


def _round_up(x, m):
    return ((x + m - 1) // m) * m


def _make_koleo_kernel(n_rows, tile, eps, gram_in_bf16, has_padding):
    """Kernel closure: n_rows/tile/eps/flags are trace-time Python constants."""

    def kernel(q_ref, k_ref, out_ref, m_scr):
        qi = pl.program_id(0)          # query-tile index ("parallel")
        ki = pl.program_id(1)          # key-tile index   ("arbitrary", reduction)
        nk = pl.num_programs(1)

        # ---- init running max at the first key tile of every query tile -----
        @pl.when(ki == 0)
        def _init():
            m_scr[...] = jnp.full_like(m_scr, -jnp.inf)

        # ---- L2-normalize both tiles in f32 (F.normalize with eps clamp) ----
        q = q_ref[...].astype(jnp.float32)                        # (T, D)
        k = k_ref[...].astype(jnp.float32)                        # (T, D)
        q_norm = jnp.sqrt(jnp.sum(q * q, axis=-1, keepdims=True))
        k_norm = jnp.sqrt(jnp.sum(k * k, axis=-1, keepdims=True))
        # One (T, 1) divide per tile instead of a (T, D)-wide divide; kept
        # exact (no approx reciprocal) so neighbour selection matches f32 ref.
        qn = q * (1.0 / jnp.maximum(q_norm, eps))
        kn = k * (1.0 / jnp.maximum(k_norm, eps))

        # ---- gram tile: NT matmul, no transpose materialized -----------------
        if gram_in_bf16:
            lhs = qn.astype(jnp.bfloat16)
            rhs = kn.astype(jnp.bfloat16)
        else:
            lhs, rhs = qn, kn
        dots = lax.dot_general(
            lhs, rhs,
            dimension_numbers=(((1,), (1,)), ((), ())),
            preferred_element_type=jnp.float32)                    # (T, T) f32

        # ---- masks ------------------------------------------------------------
        row_g = qi * tile + lax.broadcasted_iota(jnp.int32, (tile, tile), 0)
        col_g = ki * tile + lax.broadcasted_iota(jnp.int32, (tile, tile), 1)
        # self-match -> -1 (only true on diagonal tiles; real dots are >= -1,
        # so a row can only "pick itself" in the antipodal corner case).
        dots = jnp.where(row_g == col_g, jnp.float32(-1.0), dots)
        if has_padding:
            # zero-padded key rows must never win the argmax
            dots = jnp.where(col_g >= n_rows, jnp.float32(-3.0), dots)

        # ---- streamed nearest-neighbour running max ---------------------------
        tile_max = jnp.max(dots, axis=1, keepdims=True)             # (T, 1)
        m_scr[...] = jnp.maximum(m_scr[...], tile_max)

        # ---- finalize on the last key tile ------------------------------------
        @pl.when(ki == nk - 1)
        def _finalize():
            m = m_scr[...]                                          # (T, 1)
            q_sqn = jnp.sum(qn * qn, axis=-1, keepdims=True)        # == 1 (eps clamp aside)
            # ||a - b||^2 = ||a||^2 + ||b||^2 - 2 a.b   (||b||^2 == 1 assumed)
            d2 = jnp.maximum(q_sqn + 1.0 - 2.0 * m, 0.0)
            dist = jnp.sqrt(d2)
            contrib = -jnp.log(dist + eps)                          # (T, 1)
            rows = qi * tile + lax.broadcasted_iota(jnp.int32, (tile, 1), 0)
            out_ref[...] = jnp.where(rows < n_rows, contrib, 0.0)

    return kernel


def koleo_loss(student_output, eps=_EPS, *, block_rows=None, gram_in_bf16=True):
    """KoLeo loss for a (B, D) batch of embeddings. Returns a float32 scalar."""
    x = student_output                      # keep native dtype (no wrapper upcast)
    if x.ndim != 2:
        raise ValueError(f"expected (B, D) student_output, got {x.shape}")
    B, D = x.shape

    # Tile size: multiple of 8 sublanes; 256 matches the v6e/v7x MXU native dim
    # (pass block_rows=128 to match v5e's 4x128^2 MXU exactly).
    if block_rows is None:
        block_rows = min(256, _round_up(B, 8))
    T = _round_up(max(int(block_rows), 8), 8)
    B_pad = _round_up(B, T)
    if B_pad != B:
        x = jnp.pad(x, ((0, B_pad - B), (0, 0)))    # zero rows, masked in-kernel
    n_tiles = B_pad // T

    # NOTE: D maps to lanes; for production (DINO-sized) dims keep D % 128 == 0
    # for lane-dense tiles.  D here is taken as the full-array dim of the block,
    # which is always legal.
    kernel = _make_koleo_kernel(
        n_rows=B, tile=T, eps=float(eps),
        gram_in_bf16=gram_in_bf16, has_padding=(B_pad != B))

    per_row = pl.pallas_call(
        kernel,
        out_shape=jax.ShapeDtypeStruct((B_pad, 1), jnp.float32),
        grid_spec=pltpu.PrefetchScalarGridSpec(
            num_scalar_prefetch=0,
            grid=(n_tiles, n_tiles),                 # (query tiles, key tiles)
            in_specs=[
                # query tile: resident across the whole key sweep
                pl.BlockSpec((T, D), lambda qi, ki: (qi, 0)),
                # key tile: streamed along ki, auto double-buffered by Pallas
                pl.BlockSpec((T, D), lambda qi, ki: (ki, 0)),
            ],
            out_specs=pl.BlockSpec((T, 1), lambda qi, ki: (qi, 0)),
            scratch_shapes=[pltpu.VMEM((T, 1), jnp.float32)],   # running max dot
        ),
        compiler_params=pltpu.CompilerParams(
            # query tiles shard across the 2 TensorCores on v7x; the key axis is
            # the sequential reduction.
            dimension_semantics=("parallel", "arbitrary")),
    )(x, x)

    # Tiny O(B) final reduction left to XLA.
    return jnp.sum(per_row) / jnp.float32(B)


def _reference_koleo(x, eps=_EPS):
    """Pure-JAX f32 reference mirroring the PyTorch module."""
    x = x.astype(jnp.float32)
    n = x.shape[0]
    xn = x / jnp.maximum(jnp.linalg.norm(x, axis=-1, keepdims=True), eps)
    dots = jnp.dot(xn, xn.T, precision=lax.Precision.HIGHEST)
    dots = dots.at[jnp.diag_indices(n)].set(-1.0)
    nn = jnp.argmax(dots, axis=1)
    diff = xn - xn[nn] + eps
    dist = jnp.sqrt(jnp.sum(diff * diff, axis=-1))
    return -jnp.mean(jnp.log(dist + eps))


if __name__ == "__main__":
    key = jax.random.PRNGKey(0)
    k1, k2 = jax.random.split(key)

    # Small shapes; block_rows=8 forces a multi-tile (3, 3) grid so the streamed
    # running-max, diagonal-mask and finalize paths are all exercised.
    B, D = 24, 32
    x = jax.random.normal(k1, (B, D), dtype=jnp.float32)
    ref = _reference_koleo(x)

    # Default fast path: bf16-fed MXU with f32 accumulation.  Tolerance is
    # dominated by bf16 rounding of the gram inputs (can nudge near-equal
    # nearest-neighbour dots).
    loss_bf16 = koleo_loss(x, block_rows=8)
    jax.block_until_ready(loss_bf16)
    assert jnp.allclose(loss_bf16, ref, atol=1e-2, rtol=1e-2), (loss_bf16, ref)

    # Strict f32 gram: tight agreement with the f32 reference.
    loss_f32 = koleo_loss(x, block_rows=8, gram_in_bf16=False)
    jax.block_until_ready(loss_f32)
    assert jnp.allclose(loss_f32, ref, atol=5e-3, rtol=5e-3), (loss_f32, ref)

    # Auto tile-size configuration (single-tile grid here), same data.
    loss_auto = koleo_loss(x, gram_in_bf16=False)
    jax.block_until_ready(loss_auto)
    assert jnp.allclose(loss_auto, ref, atol=5e-3, rtol=5e-3), (loss_auto, ref)

    # Ragged batch: B not a multiple of the tile -> zero padding + row masking.
    B2 = 13
    x2 = jax.random.normal(k2, (B2, D), dtype=jnp.float32)
    ref2 = _reference_koleo(x2)
    loss_ragged = koleo_loss(x2, block_rows=8)
    jax.block_until_ready(loss_ragged)
    assert jnp.allclose(loss_ragged, ref2, atol=1e-2, rtol=1e-2), (loss_ragged, ref2)

    # bf16 input stays bf16 on the wire (no wrapper upcast); compute is f32/bf16
    # inside the kernel.
    loss_bf16_in = koleo_loss(x.astype(jnp.bfloat16), block_rows=8)
    jax.block_until_ready(loss_bf16_in)
    assert jnp.allclose(loss_bf16_in, ref, atol=5e-2, rtol=5e-2), (loss_bf16_in, ref)

    print("KERNEL_OK")
</pallas_src>

<mosaic_0001>
module attributes {stable_mosaic.version = 11 : i64} {
  func.func @kernel(%arg0: i32, %arg1: i32, %arg2: memref<8x32xf32, #tpu.memory_space<vmem>>, %arg3: memref<8x32xf32, #tpu.memory_space<vmem>>, %arg4: memref<8x1xf32, #tpu.memory_space<vmem>>, %arg5: memref<8x1xf32, #tpu.memory_space<vmem>>) attributes {dimension_semantics = [#tpu.dimension_semantics<parallel>, #tpu.dimension_semantics<arbitrary>], iteration_bounds = array<i64: 3, 3>, scalar_prefetch = 0 : i64, scratch_operands = 1 : i64, tpu.core_type = #tpu.core_type<tc>, window_params = [{transform_indices = @transform_0, window_bounds = array<i64: 8, 32>}, {transform_indices = @transform_1, window_bounds = array<i64: 8, 32>}, {transform_indices = @transform_2, window_bounds = array<i64: 8, 1>}]} {
    %c0_i32 = arith.constant 0 : i32
    %0 = arith.cmpi eq, %arg1, %c0_i32 : i32
    %1 = arith.extui %0 : i1 to i32
    %c0_i32_0 = arith.constant 0 : i32
    %2 = arith.cmpi ne, %1, %c0_i32_0 : i32
    scf.if %2 {
      %cst_18 = arith.constant 0xFF800000 : f32
      %47 = vector.broadcast %cst_18 : f32 to vector<8x1xf32>
      %c0_19 = arith.constant 0 : index
      %c0_20 = arith.constant 0 : index
      %48 = vector.load %arg5[%c0_19, %c0_20] : memref<8x1xf32, #tpu.memory_space<vmem>>, vector<8x1xf32>
      tpu.vector_store %arg5[%c0_19, %c0_20], %47 {strides = array<i32>} : memref<8x1xf32, #tpu.memory_space<vmem>>, vector<8x1xf32>,
    } else {
    }
    %c0 = arith.constant 0 : index
    %c0_1 = arith.constant 0 : index
    %3 = vector.load %arg2[%c0, %c0_1] : memref<8x32xf32, #tpu.memory_space<vmem>>, vector<8x32xf32>
    %c0_2 = arith.constant 0 : index
    %c0_3 = arith.constant 0 : index
    %4 = vector.load %arg3[%c0_2, %c0_3] : memref<8x32xf32, #tpu.memory_space<vmem>>, vector<8x32xf32>
    %5 = arith.mulf %3, %3 : vector<8x32xf32>
    %cst = arith.constant dense<0.000000e+00> : vector<8xf32>
    %6 = vector.multi_reduction <add>, %5, %cst [1] : vector<8x32xf32> to vector<8xf32>
    %7 = vector.shape_cast %6 : vector<8xf32> to vector<8x1xf32>
    %8 = math.sqrt %7 : vector<8x1xf32>
    %9 = arith.mulf %4, %4 : vector<8x32xf32>
    %cst_4 = arith.constant dense<0.000000e+00> : vector<8xf32>
    %10 = vector.multi_reduction <add>, %9, %cst_4 [1] : vector<8x32xf32> to vector<8xf32>
    %11 = vector.shape_cast %10 : vector<8xf32> to vector<8x1xf32>
    %12 = math.sqrt %11 : vector<8x1xf32>
    %cst_5 = arith.constant 9.99999993E-9 : f32
    %13 = vector.broadcast %cst_5 : f32 to vector<8x1xf32>
    %14 = arith.maximumf %8, %13 : vector<8x1xf32>
    %cst_6 = arith.constant 1.000000e+00 : f32
    %15 = vector.broadcast %cst_6 : f32 to vector<8x1xf32>
    %16 = arith.divf %15, %14 : vector<8x1xf32>
    %17 = vector.broadcast %16 : vector<8x1xf32> to vector<8x32xf32>
    %18 = arith.mulf %3, %17 : vector<8x32xf32>
    %cst_7 = arith.constant 9.99999993E-9 : f32
    %19 = vector.broadcast %cst_7 : f32 to vector<8x1xf32>
    %20 = arith.maximumf %12, %19 : vector<8x1xf32>
    %cst_8 = arith.constant 1.000000e+00 : f32
    %21 = vector.broadcast %cst_8 : f32 to vector<8x1xf32>
    %22 = arith.divf %21, %20 : vector<8x1xf32>
    %23 = vector.broadcast %22 : vector<8x1xf32> to vector<8x32xf32>
    %24 = arith.mulf %4, %23 : vector<8x32xf32>
    %25 = arith.truncf %18 : vector<8x32xf32> to vector<8x32xbf16>
    %26 = arith.truncf %24 : vector<8x32xf32> to vector<8x32xbf16>
    %cst_9 = arith.constant dense<0.000000e+00> : vector<8x8xf32>
    %27 = tpu.matmul %25, %26, %cst_9 {dimension_numbers = #tpu.dot_dimension_numbers<[1], [1], [0], [0], [0, 0, 1, 0], [], []>} : vector<8x32xbf16>, vector<8x32xbf16>, vector<8x8xf32> -> vector<8x8xf32>
    %c8_i32 = arith.constant 8 : i32
    %28 = arith.muli %arg0, %c8_i32 : i32
    %29 = tpu.iota {dimensions = array<i32: 0>} : vector<8x8xi32>
    %30 = vector.broadcast %28 : i32 to vector<8x8xi32>
    %31 = arith.addi %30, %29 : vector<8x8xi32>
    %c8_i32_10 = arith.constant 8 : i32
    %32 = arith.muli %arg1, %c8_i32_10 : i32
    %33 = tpu.iota {dimensions = array<i32: 1>} : vector<8x8xi32>
    %34 = vector.broadcast %32 : i32 to vector<8x8xi32>
    %35 = arith.addi %34, %33 : vector<8x8xi32>
    %36 = arith.cmpi eq, %31, %35 : vector<8x8xi32>
    %cst_11 = arith.constant -1.000000e+00 : f32
    %37 = vector.broadcast %cst_11 : f32 to vector<8x8xf32>
    %38 = arith.select %36, %37, %27 : vector<8x8xi1>, vector<8x8xf32>
    %cst_12 = arith.constant dense<0xFF800000> : vector<8xf32>
    %39 = vector.multi_reduction <maximumf>, %38, %cst_12 [1] : vector<8x8xf32> to vector<8xf32>
    %40 = vector.shape_cast %39 : vector<8xf32> to vector<8x1xf32>
    %c0_13 = arith.constant 0 : index
    %c0_14 = arith.constant 0 : index
    %41 = vector.load %arg5[%c0_13, %c0_14] : memref<8x1xf32, #tpu.memory_space<vmem>>, vector<8x1xf32>
    %42 = arith.maximumf %41, %40 : vector<8x1xf32>
    %c0_15 = arith.constant 0 : index
    %c0_16 = arith.constant 0 : index
    %43 = vector.load %arg5[%c0_15, %c0_16] : memref<8x1xf32, #tpu.memory_space<vmem>>, vector<8x1xf32>
    tpu.vector_store %arg5[%c0_15, %c0_16], %42 {strides = array<i32>} : memref<8x1xf32, #tpu.memory_space<vmem>>, vector<8x1xf32>,
    %c2_i32 = arith.constant 2 : i32
    %44 = arith.cmpi eq, %arg1, %c2_i32 : i32
    %45 = arith.extui %44 : i1 to i32
    %c0_i32_17 = arith.constant 0 : i32
    %46 = arith.cmpi ne, %45, %c0_i32_17 : i32
    scf.if %46 {
      %c0_18 = arith.constant 0 : index
      %c0_19 = arith.constant 0 : index
      %47 = vector.load %arg5[%c0_18, %c0_19] : memref<8x1xf32, #tpu.memory_space<vmem>>, vector<8x1xf32>
      %48 = arith.mulf %18, %18 : vector<8x32xf32>
      %cst_20 = arith.constant dense<0.000000e+00> : vector<8xf32>
      %49 = vector.multi_reduction <add>, %48, %cst_20 [1] : vector<8x32xf32> to vector<8xf32>
      %50 = vector.shape_cast %49 : vector<8xf32> to vector<8x1xf32>
      %cst_21 = arith.constant 1.000000e+00 : f32
      %51 = vector.broadcast %cst_21 : f32 to vector<8x1xf32>
      %52 = arith.addf %50, %51 : vector<8x1xf32>
      %cst_22 = arith.constant 2.000000e+00 : f32
      %53 = vector.broadcast %cst_22 : f32 to vector<8x1xf32>
      %54 = arith.mulf %53, %47 : vector<8x1xf32>
      %55 = arith.subf %52, %54 : vector<8x1xf32>
      %cst_23 = arith.constant 0.000000e+00 : f32
      %56 = vector.broadcast %cst_23 : f32 to vector<8x1xf32>
      %57 = arith.maximumf %55, %56 : vector<8x1xf32>
      %58 = math.sqrt %57 : vector<8x1xf32>
      %cst_24 = arith.constant 9.99999993E-9 : f32
      %59 = vector.broadcast %cst_24 : f32 to vector<8x1xf32>
      %60 = arith.addf %58, %59 : vector<8x1xf32>
      %61 = math.log %60 : vector<8x1xf32>
      %cst_25 = arith.constant 0.000000e+00 : f32
      %62 = vector.broadcast %cst_25 : f32 to vector<8x1xf32>
      %63 = arith.subf %62, %61 : vector<8x1xf32>
      %c8_i32_26 = arith.constant 8 : i32
      %64 = arith.muli %arg0, %c8_i32_26 : i32
      %65 = tpu.iota {dimensions = array<i32: 0>} : vector<8x1xi32>
      %66 = vector.broadcast %64 : i32 to vector<8x1xi32>
      %67 = arith.addi %66, %65 : vector<8x1xi32>
      %c24_i32 = arith.constant 24 : i32
      %68 = vector.broadcast %c24_i32 : i32 to vector<8x1xi32>
      %69 = arith.cmpi slt, %67, %68 : vector<8x1xi32>
      %cst_27 = arith.constant 0.000000e+00 : f32
      %70 = vector.broadcast %cst_27 : f32 to vector<8x1xf32>
      %71 = arith.select %69, %63, %70 : vector<8x1xi1>, vector<8x1xf32>
      %c0_28 = arith.constant 0 : index
      %c0_29 = arith.constant 0 : index
      %72 = vector.load %arg4[%c0_28, %c0_29] : memref<8x1xf32, #tpu.memory_space<vmem>>, vector<8x1xf32>
      tpu.vector_store %arg4[%c0_28, %c0_29], %71 {strides = array<i32>} : memref<8x1xf32, #tpu.memory_space<vmem>>, vector<8x1xf32>,
    } else {
    }
    return
  }
  func.func @transform_0(%arg0: i32, %arg1: i32) -> (i32, i32) {
    %c0_i32 = arith.constant 0 : i32
    %c0_i32_0 = arith.constant 0 : i32
    return %arg0, %c0_i32 : i32, i32
  }
  func.func @transform_1(%arg0: i32, %arg1: i32) -> (i32, i32) {
    %c0_i32 = arith.constant 0 : i32
    %c0_i32_0 = arith.constant 0 : i32
    return %arg1, %c0_i32 : i32, i32
  }
  func.func @transform_2(%arg0: i32, %arg1: i32) -> (i32, i32) {
    %c0_i32 = arith.constant 0 : i32
    %c0_i32_0 = arith.constant 0 : i32
    return %arg0, %c0_i32 : i32, i32
  }
}

</mosaic_0001>

<bundles_post_ra>
// kernel: tpu_custom_call.1
= control target key start
LH: loop header
LB: loop body
LE: loop exit
PB: predicated region body
PF: predicated region fallthrough
CT: control target
= control target key end

     0   :  { %7 = vsyncpa [#allocation4], 0  ;;  %s1024_s0 = inlined_call_operand.hbm [shape: f32[24,32], index: 0, kind: input, shape index: {}]   ;;  %s1025_s1 = inlined_call_operand.hbm [shape: f32[24,32], index: 1, kind: input, shape index: {}]   ;;  %s1026_s2 = inlined_call_operand.vmem [shape: f32[24,1], index: 2, kind: output, shape index: {}]  }
   0x1   :  { %9 = vsyncpa [#allocation4 + $0x1], 0 }
   0x2   :  { %10 = vsyncpa [#allocation6], 0 }
   0x3   :  { %12 = vsyncpa [#allocation6 + $0x1], 0  ;;  %s760_s9 = smov 0   ;;  %s762_s10 = smov 0  }
   0x4   :  { %s764_s11 = smov 0   ;;  %s766_s12 = smov 0  }
   0x5   :  { %s768_s13 = smov 0   ;;  %s770_s14 = smov 0  }
   0x6   :  { %s772_s15 = smov 0   ;;  %s774_s16 = smov 0  }
   0x7   :  { %s776_s17 = smov 0   ;;  %s778_s18 = smov 0  }
   0x8   :  { %s780_s19 = smov 0  }
   0x9 LB: > { %s442_s20 = sadd.s32 4294967295, %s738_s19   ;;  %s30_s21 = sadd.s32 1, %s734_s18  ;;  %s738_s19 = sphi %s780_s19, %s18_s19   ;;  %s734_s18 = sphi %s778_s18, %s1053_s18   ;;  %s730_s17 = sphi %s776_s17, %s1052_s17   ;;  %s726_s16 = sphi %s774_s16, %s1051_s16   ;;  %s722_s15 = sphi %s772_s15, %s1050_s15   ;;  %s718_s14 = sphi %s770_s14, %s1049_s14   ;;  %s714_s13 = sphi %s768_s13, %s1048_s13   ;;  %s710_s12 = sphi %s766_s12, %s1047_s12   ;;  %s706_s11 = sphi %s764_s11, %s1046_s11   ;;  %s702_s10 = sphi %s762_s10, %s1045_s10   ;;  %s698_s9 = sphi %s760_s9, %s1044_s9  }
   0xa   : > { %p44_p0 = scmp.ne.s32.totalorder %s718_s14, %s714_s13  ;;  %p1028_p1 = scmp.eq.s32.totalorder %s738_s19, 0 }
   0xb   : > { %p50_p2 = scmp.ne.s32.totalorder %s714_s13, %s710_s12  ;;  %p819_p3 = scmp.eq.s32.totalorder %s442_s20, 0 }
   0xc   : > { %p46_p4 = por %p1028_p1, %p44_p0  ;;  %p1027_p5 = scmp.lt.s32.totalorder %s738_s19, 9 }
   0xd   : > { %p828_p6 = por %p819_p3, %p50_p2  ;;  %s126_s24 = sand.u32 1, %s718_s14  }
   0xe   : > { %s446_s25 = sshll.u32 %s126_s24, 3  ;;  %s447_s26 = sshll.u32 %s734_s18, 7 }
   0xf   : > { %s1032_s23 = scalar_select %p828_p6, 1, 0 }
  0x10   : > { %s837_s29 = scalar_lea.hbm %s1024_s0, %s447_s26  ;;  %s130_s30 = scalar_lea.vmem [#allocation3], %s446_s25 }
  0x11   : > { %s137_s3 = sshll.u32 %s130_s30, 4  ;;  %p843_p7 = pnand %p1027_p5, %p46_p4  ;;  %s839_s3 = int_to_ptr.vmem [resolvable:$true] %s137_s3 }
  0x12   : > { %s127_s5 = scalar_lea.sflag [#allocation4], %s126_s24  ;;  %s584_s6 = scalar_lea.hbm %s837_s29, 128 }
  0x13   : > { %p585_p10 = scmp.ne.s32.totalorder %s837_s29, %s584_s6  ;;  %p586_p11 = pneg %p843_p7 }
  0x14   : > { %s589_s12 = scalar_lea.hbm %s1024_s0, 384  ;;  %p590_p0 = scmp.lt.u32.totalorder %s837_s29, %s1024_s0 }
  0x15   : > { %p587_p12 = pnand %p586_p11, %p585_p10  ;;  %p591_p2 = scmp.lt.u32.totalorder %s589_s12, %s584_s6 }
  0x16   : > { %p593_p5 = scmp.lt.u32.totalorder %s584_s6, %s837_s29 }
  0x17   : > { %p588_p13 = pneg %p587_p12  ;;  %p592_p4 = por %p591_p2, %p590_p0 }
  0x19   : > { %p594_p1 = por %p593_p5, %p592_p4 }
  0x1b   : > { %p595_p8 = pnand %p594_p1, %p588_p13 }
  0x1d   : > { %598 = shalt.err (!%p595_p8)
}
  0x1e   : > { %s599_s24 = scalar_lea.vmem %s839_s3, 128  ;;  %s740_s26 = smov [#allocation3]  }
  0x1f   : > { %p600_p10 = scmp.ne.s32.totalorder %s839_s3, %s599_s24  ;;  %s604_s27 = sshll.u32 %s740_s26, 4  ;;  %s605_s27 = int_to_ptr.vmem [resolvable:$false] %s604_s27 }
  0x20   : > { %s606_s28 = scalar_lea.vmem %s605_s27, 256  ;;  %p607_p6 = scmp.lt.s32.totalorder %s839_s3, %s605_s27 }
  0x21   : > { %p602_p12 = pnand %p600_p10, %p586_p11  ;;  %p608_p0 = scmp.lt.s32.totalorder %s606_s28, %s599_s24 }
  0x23   : > { %p603_p9 = pneg %p602_p12  ;;  %p609_p2 = por %p608_p0, %p607_p6 }
  0x25   : > { %p610_p5 = pnand %p609_p2, %p603_p9 }
  0x27   : > { %613 = shalt.err (!%p610_p5)
}
  0x28   : > { %476 = dma.hbm_to_vmem [thread:$0]  (!%p843_p7), %s837_s29, 128, %s839_s3, %s127_s5  }
  0x29   : > { %p1034_p1 = scmp.lt.s32.totalorder %s738_s19, 10  ;;  %p1035_p6 = scmp.ge.s32.totalorder %s738_s19, 1 }
  0x2a   : > { %s37_s4 = sadd.s32 1, %s718_s14  ;;  %s27_s6 = sadd.s32 1, %s730_s17 }
  0x2b   : > { %p878_p8 = pnand %p1035_p6, %p1034_p1  ;;  %p28_p9 = scmp.ge.s32.totalorder %s27_s6, 3 }
  0x2c   : > { %s63_s7 = sadd.s32 1, %s706_s11  ;;  %p70_p11 = scmp.ne.s32.totalorder %s706_s11, %s702_s10 }
  0x2d   : > { %p76_p13 = scmp.ne.s32.totalorder %s702_s10, %s698_s9  ;;  %s1055_s6 = smov (%p28_p9, %s27_s6), 0 }
  0x2e   : > { %s1057_s21 = smov (!%p28_p9, %s30_s21), %s734_s18  ;;  %s60_s29 = ssub.s32 %s730_s17, %s1055_s6 }
  0x2f   : > { %s144_s3 = sand.u32 1, %s706_s11   ;;  %p32_p7 = scmp.ge.s32.totalorder %s1057_s21, 3 }
  0x30   : > { %p61_p4 = scmp.eq.s32.totalorder %s60_s29, 0  ;;  %p1037_p10 = scmp.eq.s32.totalorder %s738_s19, 0 }
  0x31   : > { %p905_p0 = por %p76_p13, %p819_p3  ;;  %s1059_s21 = smov (%p32_p7, %s1057_s21), 0 }
  0x32   : > { %p899_p12 = por %p70_p11, %p1037_p10  ;;  %s34_s12 = ssub.s32 %s734_s18, %s1059_s21 }
  0x33   : > { %s1039_s9 = scalar_select %p905_p0, 1, 0 }
  0x34   : > { %s912_s8 = scalar_select %p61_p4, %s706_s11, %s63_s7  }
  0x35   : > { %s448_s20 = sshll.u32 %s144_s3, 3  ;;  %p35_p2 = scmp.eq.s32.totalorder %s34_s12, 0 }
  0x36   : > { %s449_s25 = sshll.u32 %s730_s17, 7  ;;  %s148_s24 = scalar_lea.vmem [#allocation5], %s448_s20 }
  0x37   : > { %s155_s26 = sshll.u32 %s148_s24, 4  ;;  %s923_s29 = scalar_lea.hbm %s1025_s1, %s449_s25  ;;  %s925_s26 = int_to_ptr.vmem [resolvable:$true] %s155_s26 }
  0x38   : > { %s918_s27 = scalar_select %p35_p2, %s718_s14, %s37_s4  }
  0x39   : > { %p1040_p3 = scmp.lt.s32.totalorder %s738_s19, 9  ;;  %s145_s4 = scalar_lea.sflag [#allocation6], %s144_s3 }
  0x3a   : > { %s614_s12 = scalar_lea.hbm %s923_s29, 128  ;;  %s619_s5 = scalar_lea.hbm %s1025_s1, 384 }
  0x3b   : > { %p931_p5 = pnand %p1040_p3, %p899_p12  ;;  %p615_p1 = scmp.ne.s32.totalorder %s923_s29, %s614_s12 }
  0x3c   : > { %p620_p13 = scmp.lt.u32.totalorder %s923_s29, %s1025_s1  ;;  %p621_p7 = scmp.lt.u32.totalorder %s619_s5, %s614_s12 }
  0x3d   : > { %p616_p6 = pneg %p931_p5  ;;  %p623_p10 = scmp.lt.u32.totalorder %s614_s12, %s923_s29 }
  0x3e   : > { %p622_p4 = por %p621_p7, %p620_p13 }
  0x3f   : > { %p617_p9 = pnand %p616_p6, %p615_p1 }
  0x40   : > { %p624_p12 = por %p623_p10, %p622_p4 }
  0x41   : > { %p618_p11 = pneg %p617_p9 }
  0x43   : > { %p625_p2 = pnand %p624_p12, %p618_p11 }
  0x45   : > { %628 = shalt.err (!%p625_p2)
}
  0x46   : > { %s629_s3 = scalar_lea.vmem %s925_s26, 128  ;;  %s741_s22 = smov [#allocation5]  }
  0x47   : > { %p630_p3 = scmp.ne.s32.totalorder %s925_s26, %s629_s3  ;;  %s634_s20 = sshll.u32 %s741_s22, 4  ;;  %s635_s20 = int_to_ptr.vmem [resolvable:$false] %s634_s20 }
  0x48   : > { %s636_s25 = scalar_lea.vmem %s635_s20, 256  ;;  %p637_p0 = scmp.lt.s32.totalorder %s925_s26, %s635_s20 }
  0x49   : > { %p632_p1 = pnand %p630_p3, %p616_p6  ;;  %p638_p13 = scmp.lt.s32.totalorder %s636_s25, %s629_s3 }
  0x4b   : > { %p633_p9 = pneg %p632_p1  ;;  %p639_p7 = por %p638_p13, %p637_p0 }
  0x4d   : > { %p640_p4 = pnand %p639_p7, %p633_p9 }
  0x4f   : > { %643 = shalt.err (!%p640_p4)
}
  0x50   : > { %479 = dma.hbm_to_vmem [thread:$0]  (!%p931_p5), %s923_s29, 128, %s925_s26, %s145_s4  }
  0x51   : > { %164 = sbr.rel (%p878_p8) target bundleno = 695 (0x2b7), region = 28  ;;  %s166_s12 = sand.u32 (!%p878_p8), 1, %s714_s13  }
  0x52   : > { %s451_s5 = sshll.u32 (!%p878_p8), %s166_s12, 3  ;;  %s167_s24 = scalar_lea.sflag (!%p878_p8), [#allocation4], %s166_s12 }
  0x53   : > { %s170_s28 = scalar_lea.vmem (!%p878_p8), [#allocation3], %s451_s5  ;;  %p1042_p6 = scmp.ne.s32.totalorder (!%p878_p8), %s1032_s23, 0 }
  0x58   : > { %689 = dma.done.wait (%p1042_p6), %s167_s24, 128  }
  0x59   : > { %691 = vsyncadd (%p1042_p6), %s167_s24, 4294967168  ;;  %s175_s7 = sand.u32 1, %s702_s10   ;;  %p1043_p0 = scmp.ne.s32.totalorder %s1039_s9, 0 }
  0x5a   : > { %s452_s3 = sshll.u32 %s175_s7, 3  ;;  %s176_s22 = scalar_lea.sflag [#allocation6], %s175_s7 }
  0x5b   : > { %s179_s26 = scalar_lea.vmem [#allocation5], %s452_s3 }
  0x5c   : > { %693 = dma.done.wait (%p1043_p0), %s176_s22, 128  }
  0x5d   : > { %695 = vsyncadd (%p1043_p0), %s176_s22, 4294967168  ;;  %p204_p8 = scmp.lt.s32.totalorder %s726_s16, 2  ;;  %p454_p5 = scmp.ne.s32.totalorder %s722_s15, 0 }
  0x5e   : > { %vm213_vm0 = vcmask (!%p454_p5), 7168   ;;  %v742_v0 = vmov (!%p454_p5), -inf  }
  0x5f   : > { %s205_s30 = scalar_select %p204_p8, %s726_s16, 2 }
  0x60   : > { %212 = sbr.rel (%p454_p5) target bundleno = 103 (0x67), region = 40  ;;  %214 = vst.msk [vmem:[#allocation2] sm:$0xff] (!%p454_p5), %vm213_vm0, %v742_v0 }
  0x61   : > { %s453_s29 = sshll.u32 %s205_s30, 3 }
  0x62   : > { %s977_s23 = scalar_lea.vmem %s1026_s2, %s453_s29 }
  0x67 PF: > { %v216_v1 = vld [vmem:[%s179_s26] sm:$0xff]  ;;  %vm218_vm1 = vcmask 261120   ;;  %v215_v2 = vld [vmem:[%s170_s28] sm:$0xff]  ;;  %v743_v7 = vmov 0.0   ;;  %vm744_vm2 = vmmov 0   ;;  %v297_v29 = vlaneseq  ;;  %s456_s9 = sshll.u32 %s726_s16, 3 }
  0x68   : > { %v229_v3 = vmul.f32 %v216_v1, %v216_v1  ;;  %v217_v4 = vmul.f32 %v215_v2, %v215_v2  ;;  %463 = vmatprep.subr.bf16.mxu0 %v743_v7  ;;  %465 = vmatprep.mubr.msk.bf16.mxu0 %vm744_vm2, %v743_v7  ;;  %s457_s25 = sshll.u32 %s722_s15, 3  ;;  %v299_v32 = vstv %s456_s9  ;;  %vm308_vm8 = vcmask 64512   ;;  %v312_v42 = vld [vmem:[#allocation2] sm:$0xff]  ;;  %p458_p11 = scmp.ne.s32.totalorder %s722_s15, 2 }
  0x69   : > { %v298_v30 = vshrl.u32 %v297_v29, 7  ;;  %v303_v31 = vand.u32 127, %v297_v29  ;;  %v304_v33 = vstv %s457_s25  ;;  %vm314_vm9 = vcmask 7168  }
  0x6a   : > { %v230_v5 = vsel %vm218_vm1, %v229_v3, 0.0  ;;  %v219_v6 = vsel %vm218_vm1, %v217_v4, 0.0 }
  0x6b   : > { %231 = vadd.xlane.f32.xlu0 %v230_v5  ;;  %v300_v34 = vadd.s32 %v299_v32, %v298_v30  ;;  %v305_v35 = vadd.s32 %v304_v33, %v303_v31 }
  0x6d   : > { %vm306_vm7 = vcmp.eq.s32.totalorder %v300_v34, %v305_v35  ;;  %vm340_vm12 = vcmp.lt.s32.totalorder (!%p458_p11), %v300_v34, 24 }
  0x6f   : > { %220 = vadd.xlane.f32.xlu0 %v219_v6 }
  0xf8   : > { %v232_v8 = vpop.xlane.xlu0 %231 }
  0xf9   : > { %572 = vrsqrt.f32 %v232_v8  ;;  %vm235_vm3 = vcmp.eq.f32.partialorder %v232_v8, inf  ;;  %v238_v12 = vand.u32 2147483648, %v232_v8  ;;  %vm237_vm4 = vcmp.eq.f32.partialorder %v232_v8, 0.0 }
  0xfc   : > { %v221_v9 = vpop.xlane.xlu0 %220 }
  0xfd   : > { %574 = vrsqrt.f32 %v221_v9  ;;  %vm224_vm5 = vcmp.eq.f32.partialorder %v221_v9, inf  ;;  %v227_v18 = vand.u32 2147483648, %v221_v9  ;;  %vm226_vm6 = vcmp.eq.f32.partialorder %v221_v9, 0.0 }
 0x103   : > { %v573_v10 = vpop.eup %572 }
 0x104   : > { %v234_v11 = vmul.f32 %v573_v10, %v232_v8 }
 0x106   : > { %v236_v13 = vsel %vm235_vm3, %v232_v8, %v234_v11 }
 0x107   : > { %v575_v14 = vpop.eup %574  ;;  %v239_v15 = vsel %vm237_vm4, %v238_v12, %v236_v13 }
 0x108   : > { %v244_v16 = vmax.f32 %v239_v15, 1e-08  ;;  %v223_v17 = vmul.f32 %v575_v14, %v221_v9 }
 0x10a   : > { %v225_v19 = vsel %vm224_vm5, %v221_v9, %v223_v17  ;;  %576 = vrcp.f32 %v244_v16 }
 0x10b   : > { %v228_v20 = vsel %vm226_vm6, %v227_v18, %v225_v19 }
 0x10c   : > { %v240_v21 = vmax.f32 %v228_v20, 1e-08 }
 0x10e   : > { %578 = vrcp.f32 %v240_v21 }
 0x114   : > { %v577_v22 = vpop.eup %576 }
 0x115   : > { %v247_v23 = vmul.f32 %v577_v22, %v216_v1 }
 0x117   : > { %v249_v24 = vpack.c.bf16 %v247_v23, %v247_v23 }
 0x118   : > { %v579_v25 = vpop.eup %578 }
 0x119   : > { %v254_v26 = vsel %vm218_vm1, %v249_v24, 0  ;;  %v243_v27 = vmul.f32 %v579_v25, %v215_v2 }
 0x11a   : > { %464 = vmatpush3.bf16.xpose.msra.mxu0 %v254_v26 }
 0x11b   : > { %v248_v28 = vpack.c.bf16 %v243_v27, %v243_v27  ;;  %v321_v45 = vmul.f32 (!%p458_p11), %v243_v27, %v243_v27 }
 0x11d   : > { %v322_v46 = vsel (!%p458_p11), %vm218_vm1, %v321_v45, 0.0 }
 0x11e   : > { %323 = vadd.xlane.f32.xlu0 (!%p458_p11), %v322_v46 }
 0x121   : > { %466 = vmatmul.mubr.msk.bf16.vlgmr.msra.gmra.mrb[0].mxu0 %vm218_vm1, %v248_v28 }
 0x1ab   : > { %v324_v49 = vpop.xlane.xlu0 (!%p458_p11), %323 }
 0x1ac   : > { %v325_v50 = vadd.f32 (!%p458_p11), 1.0, %v324_v49 }
 0x1f4   : > { %v290_v36 = vpop.f32.mrb[0].mxu0 }
 0x1f5   : > { %v307_v37 = vsel %vm306_vm7, -1.0, %v290_v36  ;;  %v467_v38 = vpop.f32.mrb[1].mxu0 }
 0x1f6   : > { %v293_v39 = vpop.f32.mrb[2].mxu0  ;;  %v309_v40 = vsel %vm308_vm8, %v307_v37, -inf }
 0x1f7   : > { %310 = vmax.xlane.f32.xlu1 %v309_v40  ;;  %v468_v41 = vpop.f32.mrb[3].mxu0 }
 0x281   : > { %319 = sbr.rel (%p458_p11) target bundleno = 695 (0x2b7), region = 44 }
 0x284   : > { %v311_v43 = vpop.xlane.xlu1 %310 }
 0x285   : > { %v313_v44 = vmax.f32 %v312_v42, %v311_v43 }
 0x287   : > { %315 = vst.msk [vmem:[#allocation2] sm:$0xff] %vm314_vm9, %v313_v44 }
 0x28e   : > { %v320_v47 = vld [vmem:[#allocation2] sm:$0xff] }
 0x28f   : > { %v326_v48 = vmul.f32 2.0, %v320_v47 }
 0x291   : > { %v327_v51 = vsub.f32 %v325_v50, %v326_v48 }
 0x293   : > { %v328_v52 = vmax.f32 %v327_v51, 0.0 }
 0x295   : > { %580 = vrsqrt.f32 %v328_v52  ;;  %vm331_vm10 = vcmp.eq.f32.partialorder %v328_v52, inf  ;;  %v334_v55 = vand.u32 2147483648, %v328_v52  ;;  %vm333_vm11 = vcmp.eq.f32.partialorder %v328_v52, 0.0 }
 0x29f   : > { %v581_v53 = vpop.eup %580 }
 0x2a0   : > { %v330_v54 = vmul.f32 %v581_v53, %v328_v52 }
 0x2a2   : > { %v332_v56 = vsel %vm331_vm10, %v328_v52, %v330_v54 }
 0x2a3   : > { %v335_v57 = vsel %vm333_vm11, %v334_v55, %v332_v56 }
 0x2a4   : > { %v336_v58 = vadd.f32 1e-08, %v335_v57 }
 0x2a6   : > { %582 = vlog2.f32 %v336_v58 }
 0x2b0   : > { %v583_v59 = vpop.eup %582 }
 0x2b1   : > { %v338_v60 = vmul.f32 0.6931472, %v583_v59 }
 0x2b3   : > { %v339_v61 = vsub.f32 0.0, %v338_v60 }
 0x2b5   : > { %v341_v62 = vsel %vm340_vm12, %v339_v61, 0.0 }
 0x2b6   : > { %342 = vst.msk [vmem:[%s977_s23] sm:$0xff] %vm314_vm9, %v341_v62 }
 0x2b7 PF: > { %s18_s19 = sadd.s32 1, %s738_s19   ;;  %s1044_s9 = smov %s702_s10 }
 0x2b8   : > { %p15_p10 = scmp.ge.s32.totalorder %s18_s19, 11   ;;  %s1045_s10 = smov %s706_s11 }
 0x2b9   : > { %s1046_s11 = smov %s912_s8  ;;  %s1047_s12 = smov %s714_s13 }
 0x2ba   : > { %s1048_s13 = smov %s718_s14  ;;  %s1049_s14 = smov %s918_s27 }
 0x2bb   : > { %s1050_s15 = smov %s730_s17  ;;  %s1051_s16 = smov %s734_s18 }
 0x2bc   : > { %s1052_s17 = smov %s1055_s6  ;;  %s1053_s18 = smov %s1059_s21 }
 0x2bd   :  { %17 = sbr.rel (!%p15_p10) target bundleno = 9 (0x9), region = 89 }
 0x2c4   :  { %362 = vsyncpa [#allocation4], 1 }
 0x2c5   :  { %364 = vsyncpa [#allocation4 + $0x1], 1 }
 0x2c6   :  { %365 = vsyncpa [#allocation6], 1 }
 0x2c7   :  { %367 = vsyncpa [#allocation6 + $0x1], 1 }

</bundles_post_ra>
